<compile_context>
chip_gen: v7x
topology: tpu7x:2x2x1
jax: 0.10.0
libtpu: 0.0.40
codegen_flags: <defaults>
</compile_context>

<pallas_src>
import functools

import jax
import jax.numpy as jnp
from jax.experimental import pallas as pl
from jax.experimental.pallas import tpu as pltpu


def _rkhs_matmul_bias_kernel(f_ref, wt_ref, b_ref, o_ref, acc_ref):
    # f_ref:   (B, tk)  batch of input functions (transposed: lane = y-mesh)
    # wt_ref:  (tk, tm) precomputed, transposed RKHS operator block
    # b_ref:   (1, tm)  bias row block (lane-dense)
    # o_ref:   (B, tm)  lane-dense output block
    # acc_ref: (B, tm)  f32 accumulator, resident across the K grid axis
    k = pl.program_id(1)

    @pl.when(k == 0)
    def _():
        acc_ref[...] = jnp.zeros_like(acc_ref)

    acc_ref[...] += jnp.dot(
        f_ref[...], wt_ref[...], preferred_element_type=jnp.float32
    )

    @pl.when(k == pl.num_programs(1) - 1)
    def _():
        o_ref[...] = (acc_ref[...] + b_ref[...]).astype(o_ref.dtype)


def build_rkhs_weight_t(x_mesh, y_mesh, *, sigma=0.25):
    """One-time (init / set_resolution) construction of the transposed operator.

    W_T[j, i] = exp(-(x_mesh[i] - y_mesh[j])^2 / (2 sigma^2)) * dy, shape (N, M).
    dy is the uniform-mesh rectangle-rule quadrature weight (matches reference).
    """
    n = y_mesh.shape[0]
    dy = (y_mesh[-1] - y_mesh[0]) / max(n - 1, 1)
    diff = y_mesh[:, None] - x_mesh[None, :]                      # (N, M)
    w_t = jnp.exp(-(diff * diff) / (2.0 * sigma * sigma)) * dy
    return w_t.astype(jnp.float32)


def _forward_transposed(f_t, w_t, bias_row, *, tm, tk, compute_dtype):
    b, n = f_t.shape
    n2, m = w_t.shape
    assert n == n2
    assert m % tm == 0 and n % tk == 0

    f_c = f_t.astype(compute_dtype)
    w_c = w_t.astype(compute_dtype)
    b_c = bias_row.astype(jnp.float32)

    return pl.pallas_call(
        _rkhs_matmul_bias_kernel,
        out_shape=jax.ShapeDtypeStruct((b, m), jnp.float32),
        grid_spec=pltpu.PrefetchScalarGridSpec(
            num_scalar_prefetch=0,
            grid=(m // tm, n // tk),
            in_specs=[
                pl.BlockSpec((b, tk), lambda i, k: (0, k)),    # f_T slab
                pl.BlockSpec((tk, tm), lambda i, k: (k, i)),   # W_T block
                pl.BlockSpec((1, tm), lambda i, k: (0, i)),    # bias row
            ],
            out_specs=pl.BlockSpec((b, tm), lambda i, k: (0, i)),
            scratch_shapes=[pltpu.VMEM((b, tm), jnp.float32)],
        ),
        compiler_params=pltpu.CompilerParams(
            dimension_semantics=("parallel", "arbitrary"),
            vmem_limit_bytes=32 * 1024 * 1024,
        ),
    )(f_c, w_c, b_c)


@functools.partial(jax.jit, static_argnames=("tm", "tk", "compute_dtype"))
def rkhs_layer_forward(f, w_t, bias_vec, *, tm=128, tk=128,
                       compute_dtype=jnp.float32):
    """Matches RKHSLayer.forward: f is (N, B), returns (M, B).

    Internally uses the lane-dense transposed formulation; the transposes are
    wrapper-side layout plumbing fused by XLA under jit.
    """
    f_t = jnp.transpose(f).astype(jnp.float32)        # (B, N)
    bias_row = bias_vec.reshape(1, -1)                # (1, M)
    out_t = _forward_transposed(
        f_t, w_t, bias_row, tm=tm, tk=tk, compute_dtype=compute_dtype
    )                                                  # (B, M)
    return jnp.transpose(out_t)                        # (M, B)


def _reference(x_mesh, y_mesh, f, bias_vec, sigma=0.25):
    n = y_mesh.shape[0]
    dy = (y_mesh[-1] - y_mesh[0]) / (n - 1)
    diff = x_mesh[:, None] - y_mesh[None, :]
    w = jnp.exp(-(diff**2) / (2.0 * sigma**2)) * dy
    return w @ f + bias_vec[:, None]


if __name__ == "__main__":
    # Deterministic synthetic setup (no checkpoint / file IO).
    M, N, B = 256, 128, 8
    key = jax.random.PRNGKey(0)
    kf, kb = jax.random.split(key)

    x_mesh = jnp.linspace(0.0, 1.0, M, dtype=jnp.float32)       # output mesh
    y_mesh = jnp.linspace(0.0, 1.0, N, dtype=jnp.float32)       # input mesh
    f = jax.random.normal(kf, (N, B), dtype=jnp.float32)        # batch of input functions
    bias_vec = jax.random.normal(kb, (M,), dtype=jnp.float32)   # bias.to_vector()

    # "set_resolution": the constant discretized operator is built once at init,
    # not in the per-call hot path.
    w_t = build_rkhs_weight_t(x_mesh, y_mesh, sigma=0.25)       # (N, M)

    out = rkhs_layer_forward(f, w_t, bias_vec)
    out = jax.block_until_ready(out)

    ref = _reference(x_mesh, y_mesh, f, bias_vec)
    assert out.shape == (M, B)
    assert jnp.allclose(out, ref, atol=1e-4, rtol=1e-4)

    print("KERNEL_OK")
</pallas_src>

<mosaic_0001>
module attributes {stable_mosaic.version = 11 : i64} {
  func.func @_rkhs_matmul_bias_kernel(%arg0: i32, %arg1: i32, %arg2: memref<8x128xf32, #tpu.memory_space<vmem>>, %arg3: memref<128x128xf32, #tpu.memory_space<vmem>>, %arg4: memref<1x128xf32, #tpu.memory_space<vmem>>, %arg5: memref<8x128xf32, #tpu.memory_space<vmem>>, %arg6: memref<8x128xf32, #tpu.memory_space<vmem>>) attributes {dimension_semantics = [#tpu.dimension_semantics<parallel>, #tpu.dimension_semantics<arbitrary>], iteration_bounds = array<i64: 2, 1>, scalar_prefetch = 0 : i64, scratch_operands = 1 : i64, tpu.core_type = #tpu.core_type<tc>, window_params = [{transform_indices = @transform_0, window_bounds = array<i64: 8, 128>}, {transform_indices = @transform_1, window_bounds = array<i64: 128, 128>}, {transform_indices = @transform_2, window_bounds = array<i64: 1, 128>}, {transform_indices = @transform_3, window_bounds = array<i64: 8, 128>}]} {
    %c0_i32 = arith.constant 0 : i32
    %0 = arith.cmpi eq, %arg1, %c0_i32 : i32
    %1 = arith.extui %0 : i1 to i32
    %c0_i32_0 = arith.constant 0 : i32
    %2 = arith.cmpi ne, %1, %c0_i32_0 : i32
    scf.if %2 {
      %cst_10 = arith.constant 0.000000e+00 : f32
      %12 = vector.broadcast %cst_10 : f32 to vector<8x128xf32>
      %c0_11 = arith.constant 0 : index
      %c0_12 = arith.constant 0 : index
      %13 = vector.load %arg6[%c0_11, %c0_12] : memref<8x128xf32, #tpu.memory_space<vmem>>, vector<8x128xf32>
      tpu.vector_store %arg6[%c0_11, %c0_12], %12 {strides = array<i32>} : memref<8x128xf32, #tpu.memory_space<vmem>>, vector<8x128xf32>,
    } else {
    }
    %c0 = arith.constant 0 : index
    %c0_1 = arith.constant 0 : index
    %3 = vector.load %arg6[%c0, %c0_1] : memref<8x128xf32, #tpu.memory_space<vmem>>, vector<8x128xf32>
    %c0_2 = arith.constant 0 : index
    %c0_3 = arith.constant 0 : index
    %4 = vector.load %arg2[%c0_2, %c0_3] : memref<8x128xf32, #tpu.memory_space<vmem>>, vector<8x128xf32>
    %c0_4 = arith.constant 0 : index
    %c0_5 = arith.constant 0 : index
    %5 = vector.load %arg3[%c0_4, %c0_5] : memref<128x128xf32, #tpu.memory_space<vmem>>, vector<128x128xf32>
    %cst = arith.constant dense<0.000000e+00> : vector<8x128xf32>
    %6 = tpu.matmul %4, %5, %cst {dimension_numbers = #tpu.dot_dimension_numbers<[1], [0], [0], [1], [0, 0, 1, 1], [], []>} : vector<8x128xf32>, vector<128x128xf32>, vector<8x128xf32> -> vector<8x128xf32>
    %7 = arith.addf %3, %6 : vector<8x128xf32>
    %c0_6 = arith.constant 0 : index
    %c0_7 = arith.constant 0 : index
    %8 = vector.load %arg6[%c0_6, %c0_7] : memref<8x128xf32, #tpu.memory_space<vmem>>, vector<8x128xf32>
    tpu.vector_store %arg6[%c0_6, %c0_7], %7 {strides = array<i32>} : memref<8x128xf32, #tpu.memory_space<vmem>>, vector<8x128xf32>,
    %c0_i32_8 = arith.constant 0 : i32
    %9 = arith.cmpi eq, %arg1, %c0_i32_8 : i32
    %10 = arith.extui %9 : i1 to i32
    %c0_i32_9 = arith.constant 0 : i32
    %11 = arith.cmpi ne, %10, %c0_i32_9 : i32
    scf.if %11 {
      %c0_10 = arith.constant 0 : index
      %c0_11 = arith.constant 0 : index
      %12 = vector.load %arg6[%c0_10, %c0_11] : memref<8x128xf32, #tpu.memory_space<vmem>>, vector<8x128xf32>
      %c0_12 = arith.constant 0 : index
      %c0_13 = arith.constant 0 : index
      %13 = vector.load %arg4[%c0_12, %c0_13] : memref<1x128xf32, #tpu.memory_space<vmem>>, vector<1x128xf32>
      %14 = vector.broadcast %13 : vector<1x128xf32> to vector<8x128xf32>
      %15 = arith.addf %12, %14 : vector<8x128xf32>
      %c0_14 = arith.constant 0 : index
      %c0_15 = arith.constant 0 : index
      %16 = vector.load %arg5[%c0_14, %c0_15] : memref<8x128xf32, #tpu.memory_space<vmem>>, vector<8x128xf32>
      tpu.vector_store %arg5[%c0_14, %c0_15], %15 {strides = array<i32>} : memref<8x128xf32, #tpu.memory_space<vmem>>, vector<8x128xf32>,
    } else {
    }
    return
  }
  func.func @transform_0(%arg0: i32, %arg1: i32) -> (i32, i32) {
    %c0_i32 = arith.constant 0 : i32
    %c0_i32_0 = arith.constant 0 : i32
    return %c0_i32, %arg1 : i32, i32
  }
  func.func @transform_1(%arg0: i32, %arg1: i32) -> (i32, i32) {
    %c0_i32 = arith.constant 0 : i32
    return %arg1, %arg0 : i32, i32
  }
  func.func @transform_2(%arg0: i32, %arg1: i32) -> (i32, i32) {
    %c0_i32 = arith.constant 0 : i32
    %c0_i32_0 = arith.constant 0 : i32
    return %c0_i32, %arg0 : i32, i32
  }
  func.func @transform_3(%arg0: i32, %arg1: i32) -> (i32, i32) {
    %c0_i32 = arith.constant 0 : i32
    %c0_i32_0 = arith.constant 0 : i32
    return %c0_i32, %arg0 : i32, i32
  }
}

</mosaic_0001>

<bundles_post_ra>
// kernel: rkhs_layer_forward.1
= control target key start
LH: loop header
LB: loop body
LE: loop exit
PB: predicated region body
PF: predicated region fallthrough
CT: control target
= control target key end

     0   :  { %8 = vsyncpa [#allocation4], 0  ;;  %s1054_s0 = inlined_call_operand.hbm [shape: f32[8,128], index: 0, kind: input, shape index: {}]   ;;  %s1055_s1 = inlined_call_operand.hbm [shape: f32[128,256], index: 1, kind: input, shape index: {}]   ;;  %s1056_s2 = inlined_call_operand.vmem [shape: f32[1,256], index: 2, kind: input, shape index: {}]   ;;  %s1057_s3 = inlined_call_operand.hbm [shape: f32[8,256], index: 3, kind: output, shape index: {}]  }
   0x1   :  { %9 = vsyncpa [#allocation7], 0 }
   0x2   :  { %11 = vsyncpa [#allocation7 + $0x1], 0 }
   0x3   :  { %12 = vsyncpa [#allocation5], 0 }
   0x4   :  { %14 = vsyncpa [#allocation5 + $0x1], 0  ;;  %s811_s12 = smov 0   ;;  %s813_s13 = smov 0  }
   0x5   :  { %s815_s14 = smov 0   ;;  %s817_s15 = smov 0  }
   0x6   :  { %s819_s16 = smov 0   ;;  %s821_s17 = smov 0  }
   0x7 LB: > { %s465_s18 = sadd.s32 4294967295, %s780_s17   ;;  %s466_s19 = sadd.s32 4294967294, %s780_s17   ;;  %s780_s17 = sphi %s821_s17, %s20_s17   ;;  %s776_s16 = sphi %s819_s16, %s1085_s16   ;;  %s772_s15 = sphi %s817_s15, %s1084_s15   ;;  %s768_s14 = sphi %s815_s14, %s1083_s14   ;;  %s764_s13 = sphi %s813_s13, %s1082_s13   ;;  %s760_s12 = sphi %s811_s12, %s1081_s12  }
   0x8   : > { %s67_s20 = sadd.s32 1, %s768_s14  ;;  %p74_p0 = scmp.ne.s32.totalorder %s768_s14, %s764_s13 }
   0x9   : > { %p75_p1 = scmp.eq.s32.totalorder %s780_s17, 0  ;;  %p80_p2 = scmp.ne.s32.totalorder %s764_s13, %s760_s12 }
   0xa   : > { %p849_p3 = scmp.eq.s32.totalorder %s465_s18, 0  ;;  %p130_p4 = scmp.eq.s32.totalorder %s465_s18, 1 }
   0xb   : > { %p853_p5 = por %p75_p1, %p74_p0  ;;  %p136_p6 = scmp.eq.s32.totalorder %s466_s19, 1 }
   0xc   : > { %s1064_s21 = scalar_select %p849_p3, 1, 0 }
   0xd   : > { %p859_p7 = por %p849_p3, %p80_p2  ;;  %p863_p8 = por %p130_p4, %p74_p0 }
   0xe   : > { %p867_p9 = por %p136_p6, %p80_p2  ;;  %p467_p10 = scmp.ge.s32.totalorder %s780_s17, 1 }
   0xf   : > { %s1066_s23 = scalar_select %p859_p7, 1, 0 }
  0x10   : > { %s1067_s24 = scalar_select %p863_p8, 1, 0 }
  0x11   : > { %s1068_s25 = scalar_select %p867_p9, 1, 0 }
  0x12   : > { %p143_p11 = scmp.lt.s32.totalorder %s780_s17, 3  ;;  %s782_s27 = smov [#allocation3]  }
  0x13   : > { %s158_s28 = sshll.u32 %s782_s27, 4  ;;  %p578_p1 = scmp.lt.s32.totalorder %s780_s17, 2  ;;  %s159_s28 = int_to_ptr.vmem [resolvable:$true] %s158_s28 }
  0x14   : > { %p874_p13 = pnand %p467_p10, %p143_p11  ;;  %s32_s4 = sadd.s32 1, %s776_s16 }
  0x15   : > { %p883_p4 = pnand %p578_p1, %p853_p5  ;;  %p894_p6 = scmp.ge.s32.totalorder %s32_s4, 2 }
  0x16   : > { %s1069_s26 = scalar_select %p874_p13, 1, 0 }
  0x17   : > { %p565_p0 = pneg %p874_p13  ;;  %s169_s6 = sand.u32 1, %s768_s14  }
  0x18   : > { %s1070_s29 = scalar_select %p883_p4, 1, 0 }
  0x19   : > { %p889_p2 = pnand %p565_p0, %p849_p3  ;;  %s636_s9 = scalar_lea.hbm %s1054_s0, 128 }
  0x1a   : > { %s1072_s5 = scalar_select %p894_p6, 1, 0 }
  0x1b   : > { %p637_p5 = scmp.ne.s32.totalorder %s1054_s0, %s636_s9  ;;  %p638_p10 = pneg %p889_p2 }
  0x1c   : > { %p643_p0 = scmp.lt.u32.totalorder %s636_s9, %s1054_s0 }
  0x1d   : > { %p639_p11 = pnand %p638_p10, %p637_p5 }
  0x1f   : > { %p640_p1 = pneg %p639_p11 }
  0x21   : > { %p645_p12 = pnand %p643_p0, %p640_p1 }
  0x23   : > { %648 = shalt.err (!%p645_p12)
}
  0x24   : > { %s649_s22 = scalar_lea.vmem %s159_s28, 128  ;;  %p657_p3 = scmp.lt.s32.totalorder %s159_s28, %s159_s28 }
  0x25   : > { %p650_p9 = scmp.ne.s32.totalorder %s159_s28, %s649_s22  ;;  %p658_p13 = scmp.lt.s32.totalorder %s649_s22, %s649_s22 }
  0x27   : > { %p652_p8 = pnand %p650_p9, %p638_p10  ;;  %p659_p4 = por %p658_p13, %p657_p3 }
  0x29   : > { %p653_p7 = pneg %p652_p8 }
  0x2b   : > { %p660_p6 = pnand %p659_p4, %p653_p7 }
  0x2d   : > { %663 = shalt.err (!%p660_p6)
}
  0x2e   : > { %568 = dma.hbm_to_vmem [thread:$0]  (!%p889_p2), %s1054_s0, 128, %s159_s28, [#allocation4]  }
  0x2f   : > { %p1073_p9 = scmp.ne.s32.totalorder %s1072_s5, 0  ;;  %s470_s8 = sshll.u32 %s169_s6, 7 }
  0x30   : > { %s471_s10 = sshll.u32 %s776_s16, 7  ;;  %s173_s19 = scalar_lea.vmem [#allocation6], %s470_s8 }
  0x31   : > { %s1087_s4 = smov (%p1073_p9, %s32_s4), 0  ;;  %s925_s18 = scalar_lea.hbm %s1055_s1, %s471_s10 }
  0x32   : > { %s63_s9 = ssub.s32 %s776_s16, %s1087_s4  ;;  %s182_s22 = sshll.u32 %s173_s19, 4  ;;  %s932_s22 = int_to_ptr.vmem [resolvable:$true] %s182_s22 }
  0x33   : > { %p65_p3 = scmp.eq.s32.totalorder %s63_s9, 0  ;;  %s934_s5 = scalar_lea.sflag [#allocation7], %s169_s6 }
  0x34   : > { %s664_s27 = scalar_lea.hbm %s925_s18, 2048  ;;  %p1074_p8 = scmp.ne.s32.totalorder %s1070_s29, 0 }
  0x35   : > { %s930_s28 = scalar_select %p65_p3, %s768_s14, %s67_s20  }
  0x36   : > { %p665_p7 = scmp.ne.s32.totalorder %s925_s18, %s664_s27  ;;  %p666_p12 = pneg %p1074_p8 }
  0x37   : > { %s669_s8 = scalar_lea.hbm %s1055_s1, 4096  ;;  %p670_p2 = scmp.lt.u32.totalorder %s925_s18, %s1055_s1 }
  0x38   : > { %p667_p13 = pnand %p666_p12, %p665_p7  ;;  %p671_p6 = scmp.lt.u32.totalorder %s669_s8, %s664_s27 }
  0x39   : > { %p673_p10 = scmp.lt.u32.totalorder %s664_s27, %s925_s18 }
  0x3a   : > { %p668_p4 = pneg %p667_p13  ;;  %p672_p5 = por %p671_p6, %p670_p2 }
  0x3c   : > { %p674_p11 = por %p673_p10, %p672_p5 }
  0x3e   : > { %p675_p1 = pnand %p674_p11, %p668_p4 }
  0x40   : > { %678 = shalt.err (!%p675_p1)
}
  0x41   : > { %s679_s20 = scalar_lea.vmem %s932_s22, 2048  ;;  %s783_s6 = smov [#allocation6]  }
  0x42   : > { %p680_p0 = scmp.ne.s32.totalorder %s932_s22, %s679_s20  ;;  %s684_s11 = sshll.u32 %s783_s6, 4  ;;  %s685_s11 = int_to_ptr.vmem [resolvable:$false] %s684_s11 }
  0x43   : > { %s686_s19 = scalar_lea.vmem %s685_s11, 4096  ;;  %p687_p7 = scmp.lt.s32.totalorder %s932_s22, %s685_s11 }
  0x44   : > { %p682_p9 = pnand %p680_p0, %p666_p12  ;;  %p688_p13 = scmp.lt.s32.totalorder %s686_s19, %s679_s20 }
  0x46   : > { %p683_p3 = pneg %p682_p9  ;;  %p689_p2 = por %p688_p13, %p687_p7 }
  0x48   : > { %p690_p6 = pnand %p689_p2, %p683_p3 }
  0x4a   : > { %693 = shalt.err (!%p690_p6)
}
  0x4b   : > { %s784_s27 = smov 256   ;;  %s785_s7 = smov 128  }
  0x4c   : > { %s786_s9 = smov 8   ;;  %p1075_p12 = scmp.ne.s32.totalorder %s1069_s26, 0 }
  0x4d   : > { %572 = dma.hbm_to_vmem [thread:$0]  (!%p1074_p8), %s925_s18, 2048, %s932_s22, %s934_s5, %s784_s27, %s785_s7, %s786_s9  }
  0x4e   : > { %200 = sbr.rel (%p1075_p12) target bundleno = 352 (0x160), region = 32  ;;  %p1076_p4 = scmp.ne.s32.totalorder (!%p1075_p12), %s1064_s21, 0 }
  0x55   : > { %747 = dma.done.wait (%p1076_p4), [#allocation4], 128  }
  0x56   : > { %749 = vsyncadd (%p1076_p4), [#allocation4], 4294967168  ;;  %s969_s8 = sand.u32 1, %s764_s13   ;;  %p1077_p8 = scmp.ne.s32.totalorder %s1066_s23, 0 }
  0x57   : > { %s474_s10 = sshll.u32 %s969_s8, 7  ;;  %s207_s30 = scalar_lea.sflag [#allocation7], %s969_s8 }
  0x58   : > { %s973_s20 = scalar_lea.vmem [#allocation6], %s474_s10 }
  0x59   : > { %751 = dma.done.wait (%p1077_p8), %s207_s30, 2048  }
  0x5a   : > { %753 = vsyncadd (%p1077_p8), %s207_s30, 4294965248  ;;  %v787_v0 = vmov 0.0|0.0   ;;  %vm788_vm0 = vmmov 0   ;;  %v789_v1 = vmov 0.0   ;;  %v247_v2 = vld [vmem:[%s973_s20] sm:$0xff]  ;;  %v248_v3 = vld [vmem:[%s973_s20 + $0x8] sm:$0xff] }
  0x5b   : > { %533 = vmatprep.subr.bf16.mxu0 %v787_v0  ;;  %530 = vmatprep.mubr.msk.f32.mxu0 %vm788_vm0, %v789_v1  ;;  %v249_v4 = vld [vmem:[%s973_s20 + $0x10] sm:$0xff]  ;;  %v534_v5 = vpack.c.bf16 %v248_v3, %v247_v2  ;;  %v250_v6 = vld [vmem:[%s973_s20 + $0x18] sm:$0xff]  ;;  %v251_v8 = vld [vmem:[%s973_s20 + $0x20] sm:$0xff]  ;;  %p237_p5 = scmp.lt.s32.totalorder %s772_s15, 1  ;;  %s475_s23 = sshll.u32 %s969_s8, 3 }
  0x5c   : > { %v537_v7 = vpack.c.bf16 %v250_v6, %v249_v4  ;;  %v252_v9 = vld [vmem:[%s973_s20 + $0x28] sm:$0xff]  ;;  %v253_v11 = vld [vmem:[%s973_s20 + $0x30] sm:$0xff]  ;;  %v254_v12 = vld [vmem:[%s973_s20 + $0x38] sm:$0xff]  ;;  %s478_s22 = sshll.u32 %s772_s15, 7  ;;  %s235_s5 = scalar_lea.vmem [#allocation8], %s475_s23 }
  0x5d   : > { %535 = vmatpush3.bf16.msra.mxu0 %v534_v5  ;;  %v540_v10 = vpack.c.bf16 %v252_v9, %v251_v8  ;;  %v543_v13 = vpack.c.bf16 %v254_v12, %v253_v11  ;;  %v255_v14 = vld [vmem:[%s973_s20 + $0x40] sm:$0xff]  ;;  %v256_v15 = vld [vmem:[%s973_s20 + $0x48] sm:$0xff]  ;;  %v257_v17 = vld [vmem:[%s973_s20 + $0x50] sm:$0xff]  ;;  %s238_s21 = scalar_select %p237_p5, %s772_s15, 1 }
  0x5e   : > { %536 = vmatprep.subr.bf16.mxu0 %v787_v0  ;;  %v546_v16 = vpack.c.bf16 %v256_v15, %v255_v14  ;;  %v258_v18 = vld [vmem:[%s973_s20 + $0x58] sm:$0xff]  ;;  %v259_v20 = vld [vmem:[%s973_s20 + $0x60] sm:$0xff]  ;;  %v260_v21 = vld [vmem:[%s973_s20 + $0x68] sm:$0xff]  ;;  %s362_s6 = sshll.u32 %s235_s5, 4  ;;  %s1005_s27 = scalar_lea.hbm %s1057_s3, %s478_s22  ;;  %s1007_s6 = int_to_ptr.vmem [resolvable:$true] %s362_s6 }
  0x5f   : > { %v549_v19 = vpack.c.bf16 %v258_v18, %v257_v17  ;;  %v552_v22 = vpack.c.bf16 %v260_v21, %v259_v20  ;;  %v261_v23 = vld [vmem:[%s973_s20 + $0x70] sm:$0xff]  ;;  %v262_v24 = vld [vmem:[%s973_s20 + $0x78] sm:$0xff]  ;;  %s239_s18 = scalar_lea.vmem %s1056_s2, %s238_s21  ;;  %s349_s7 = scalar_lea.sflag [#allocation5], %s969_s8 }
  0x60   : > { %v555_v25 = vpack.c.bf16 %v262_v24, %v261_v23  ;;  %v246_v26 = vld [vmem:[#allocation3] sm:$0xff]  ;;  %s694_s9 = scalar_lea.vmem %s1007_s6, 128  ;;  %p1078_p11 = scmp.ne.s32.totalorder %s1067_s24, 0 }
  0x61   : > { %538 = vmatpush3.bf16.msra.mxu0 %v537_v7  ;;  %v476_v27 = vld [vmem:[%s239_s18] ss:$0 sm:$0xff]  ;;  %p695_p10 = scmp.ne.s32.totalorder %s1007_s6, %s694_s9  ;;  %s790_s15 = smov [#allocation8]  }
  0x62   : > { %539 = vmatprep.subr.bf16.mxu0 %v787_v0  ;;  %s698_s10 = sshll.u32 %s790_s15, 4  ;;  %s699_s10 = int_to_ptr.vmem [resolvable:$false] %s698_s10 }
  0x63   : > { %p696_p1 = pnand %p695_p10, %p1078_p11  ;;  %s700_s30 = scalar_lea.vmem %s699_s10, 256 }
  0x64   : > { %p701_p9 = scmp.lt.s32.totalorder %s1007_s6, %s699_s10  ;;  %p702_p3 = scmp.lt.s32.totalorder %s700_s30, %s694_s9 }
  0x65   : > { %541 = vmatpush3.bf16.msra.mxu0 %v540_v10  ;;  %p697_p0 = pneg %p696_p1 }
  0x66   : > { %542 = vmatprep.subr.bf16.mxu0 %v787_v0  ;;  %p703_p7 = por %p702_p3, %p701_p9 }
  0x68   : > { %p704_p13 = pnand %p703_p7, %p697_p0 }
  0x69   : > { %544 = vmatpush3.bf16.msra.mxu0 %v543_v13 }
  0x6a   : > { %545 = vmatprep.subr.bf16.mxu0 %v787_v0 }
  0x6d   : > { %547 = vmatpush3.bf16.msra.mxu0 %v546_v16 }
  0x6e   : > { %548 = vmatprep.subr.bf16.mxu0 %v787_v0 }
  0x71   : > { %550 = vmatpush3.bf16.msra.mxu0 %v549_v19 }
  0x72   : > { %551 = vmatprep.subr.bf16.mxu0 %v787_v0 }
  0x75   : > { %553 = vmatpush3.bf16.msra.mxu0 %v552_v22 }
  0x76   : > { %554 = vmatprep.subr.bf16.mxu0 %v787_v0 }
  0x79   : > { %556 = vmatpush3.bf16.msra.mxu0 %v555_v25 }
  0x7c   : > { %531 = vmatmul.mubr.f32.vlgmr.msra.gmra.mrb[0].mxu0 %v246_v26 }
 0x14f   : > { %v329_v28 = vpop.f32.mrb[0].mxu0 }
 0x150   : > { %v346_v29 = vadd.f32 %v476_v27, %v329_v28  ;;  %v532_v30 = vpop.f32.mrb[1].mxu0 }
 0x152   : > { %347 = vst [vmem:[%s235_s5] sm:$0xff] %v346_v29 }
 0x153   : > { %707 = shalt.err (!%p704_p13)
}
 0x154   : > { %s708_s8 = scalar_lea.hbm %s1005_s27, 128  ;;  %s712_s23 = scalar_lea.hbm %s1057_s3, 256 }
 0x155   : > { %p709_p2 = scmp.ne.s32.totalorder %s1005_s27, %s708_s8  ;;  %p713_p4 = scmp.lt.u32.totalorder %s1005_s27, %s1057_s3 }
 0x156   : > { %p714_p8 = scmp.lt.u32.totalorder %s712_s23, %s708_s8  ;;  %p716_p10 = scmp.lt.u32.totalorder %s708_s8, %s1005_s27 }
 0x157   : > { %p710_p6 = pnand %p709_p2, %p1078_p11 }
 0x158   : > { %p715_p5 = por %p714_p8, %p713_p4 }
 0x159   : > { %p711_p12 = pneg %p710_p6 }
 0x15a   : > { %p717_p1 = por %p716_p10, %p715_p5 }
 0x15c   : > { %p718_p0 = pnand %p717_p1, %p711_p12 }
 0x15e   : > { %721 = shalt.err (!%p718_p0)
}
 0x15f   : > { %563 = dma.vmem_to_hbm [thread:$0]  (%p1078_p11), %s1007_s6, 128, %s1005_s27, %s349_s7  }
 0x160 PF: > { %s374_s18 = sand.u32 1, %s760_s12   ;;  %p1079_p9 = scmp.ne.s32.totalorder %s1068_s25, 0 }
 0x161   : > { %p1080_p3 = scmp.ge.s32.totalorder %s780_s17, 2  ;;  %s375_s22 = scalar_lea.sflag [#allocation5], %s374_s18 }
 0x163   : > { %p574_p7 = pnand %p1080_p3, %p1079_p9 }
 0x165   : > { %755 = dma.done.wait (!%p574_p7), %s375_s22, 128  }
 0x166   : > { %757 = vsyncadd (!%p574_p7), %s375_s22, 4294967168  ;;  %s20_s17 = sadd.s32 1, %s780_s17   ;;  %s1081_s12 = smov %s764_s13 }
 0x167   : > { %p17_p13 = scmp.ge.s32.totalorder %s20_s17, 4   ;;  %s1082_s13 = smov %s768_s14 }
 0x168   : > { %s1083_s14 = smov %s930_s28  ;;  %s1084_s15 = smov %s776_s16 }
 0x169   : > { %s1085_s16 = smov %s1087_s4  ;;  %19 = sbr.rel (!%p17_p13) target bundleno = 7 (0x7), region = 94 }
 0x170   :  { %380 = vsyncpa [#allocation4], 1 }
 0x171   :  { %382 = vsyncpa [#allocation4 + $0x1], 1 }
 0x172   :  { %383 = vsyncpa [#allocation7], 1 }
 0x173   :  { %385 = vsyncpa [#allocation7 + $0x1], 1 }
 0x174   :  { %386 = vsyncpa [#allocation5], 1 }
 0x175   :  { %388 = vsyncpa [#allocation5 + $0x1], 1 }

</bundles_post_ra>
